<compile_context>
chip_gen: v6e
topology: v6e:2x2x1
jax: 0.10.0
libtpu: 0.0.40
codegen_flags: <defaults>
</compile_context>

<pallas_src>
import functools
import math

import jax
import jax.numpy as jnp
from jax.experimental import pallas as pl
from jax.experimental.pallas import tpu as pltpu


_INV_SQRT2 = 1.0 / math.sqrt(2.0)


def _gelu(x, approximate=False):
    if approximate:
        # tanh-approx GELU: cheaper on the VPU (v6e/v7x), slight deviation
        # from the PyTorch default numerics.
        return jax.nn.gelu(x, approximate=True)
    # PyTorch's default F.gelu is the exact (erf-based) GELU.
    return 0.5 * x * (1.0 + jax.lax.erf(x * _INV_SQRT2))


# ---------------------------------------------------------------------------
# Kernels
# ---------------------------------------------------------------------------
def _mlp_resident_kernel(x_ref, w1_ref, b1_ref, w2_ref, b2_ref, o_ref,
                         *, approximate_gelu):
    """W1/W2 fully VMEM-resident; grid is row tiles only."""
    x = x_ref[...].astype(w1_ref.dtype)                         # in-kernel cast
    h = jnp.dot(x, w1_ref[...],
                preferred_element_type=jnp.float32) + b1_ref[...]   # (tm, M) f32
    h = _gelu(h, approximate_gelu)
    y = jnp.dot(h.astype(w2_ref.dtype), w2_ref[...],
                preferred_element_type=jnp.float32) + b2_ref[...]   # (tm, H) f32
    o_ref[...] = y.astype(o_ref.dtype)


def _mlp_chunked_kernel(x_ref, w1_ref, b1_ref, w2_ref, b2_ref, o_ref, acc_ref,
                        *, approximate_gelu):
    """Fallback: mlp_dim (M) chunked on the trailing (reduction) grid axis."""
    j = pl.program_id(1)

    @pl.when(j == 0)
    def _():
        acc_ref[...] = jnp.zeros_like(acc_ref)

    x = x_ref[...].astype(w1_ref.dtype)
    h = jnp.dot(x, w1_ref[...],
                preferred_element_type=jnp.float32) + b1_ref[...]   # (tm, tM) f32
    h = _gelu(h, approximate_gelu)
    acc_ref[...] += jnp.dot(h.astype(w2_ref.dtype), w2_ref[...],
                            preferred_element_type=jnp.float32)

    @pl.when(j == pl.num_programs(1) - 1)
    def _():
        o_ref[...] = (acc_ref[...] + b2_ref[...]).astype(o_ref.dtype)


# ---------------------------------------------------------------------------
# Helpers
# ---------------------------------------------------------------------------
def _cdiv(a, b):
    return (a + b - 1) // b


def _round_up(v, m):
    return _cdiv(v, m) * m


def _vmem_capacity_bytes():
    try:
        return int(pltpu.get_tpu_info().vmem_capacity_bytes)
    except Exception:
        return 64 * 1024 * 1024  # conservative: v7x per-TensorCore VMEM


def _pick_row_tile(n, row_tile):
    if n >= 2 * row_tile:
        return row_tile
    # Small-N: aim for >= 2 row blocks so the "parallel" axis can shard across
    # megacore TensorCores; keep a multiple of 8 sublanes.
    return max(8, min(row_tile, _round_up(_cdiv(n, 2), 8)))


def prepare_mlp_params(w1, b1, w2, b2, compute_dtype=jnp.bfloat16):
    """One-time parameter prep: hoists the bf16 weight casts (and bias
    reshapes) out of the per-call HBM path."""
    H, M = w1.shape
    return (w1.astype(compute_dtype),
            b1.reshape(1, M).astype(jnp.float32),
            w2.astype(compute_dtype),
            b2.reshape(1, H).astype(jnp.float32))


# ---------------------------------------------------------------------------
# Forward
# ---------------------------------------------------------------------------
def mlp_forward(x, w1, b1, w2, b2, *, row_tile=256,
                compute_dtype=jnp.bfloat16, approximate_gelu=False):
    """x: (..., H). Weights stored (in_features, out_features): y = x @ W + b.
    Prefer passing weights through prepare_mlp_params (pre-cast to bf16)."""
    orig_shape = x.shape
    H = orig_shape[-1]
    M = w1.shape[1]
    x2 = x.reshape(-1, H)
    N = x2.shape[0]
    out_dtype = x.dtype

    # No-op if prepare_mlp_params was already applied (the recommended path).
    if w1.dtype != compute_dtype:
        w1 = w1.astype(compute_dtype)
    if w2.dtype != compute_dtype:
        w2 = w2.astype(compute_dtype)
    b1 = b1.reshape(1, M).astype(jnp.float32)
    b2 = b2.reshape(1, H).astype(jnp.float32)

    wsize = jnp.dtype(compute_dtype).itemsize
    xsize = jnp.dtype(x.dtype).itemsize
    osize = jnp.dtype(out_dtype).itemsize

    vmem_cap = _vmem_capacity_bytes()
    budget = int(vmem_cap * 0.55)            # headroom for compiler scratch
    weight_bytes = 2 * H * M * wsize         # W1 + W2 (bf16)
    bias_bytes = (M + H) * 4

    # ----- primary path: resident weights, single row-tile grid axis --------
    tm = _pick_row_tile(N, row_tile)
    num_row = _cdiv(N, tm)
    # Conservative: assume the pipeline double-buffers everything, including
    # the constant-index weight blocks.
    resident_need = (2 * weight_bytes
                     + 2 * tm * H * (xsize + osize)
                     + 2 * bias_bytes)

    if resident_need <= budget:
        vmem_limit = min(int(vmem_cap * 0.75),
                         max(32 << 20, resident_need + (16 << 20)))
        cost = pl.CostEstimate(
            flops=4 * num_row * tm * H * M,          # two matmuls
            transcendentals=num_row * tm * M,        # erf/tanh on the activation
            bytes_accessed=(N * H * (xsize + osize)  # x read + y write
                            + weight_bytes + bias_bytes),  # weights read ONCE
        )
        kernel = functools.partial(_mlp_resident_kernel,
                                   approximate_gelu=approximate_gelu)
        out = pl.pallas_call(
            kernel,
            out_shape=jax.ShapeDtypeStruct((N, H), out_dtype),
            grid_spec=pltpu.PrefetchScalarGridSpec(
                num_scalar_prefetch=0,
                grid=(num_row,),
                in_specs=[
                    pl.BlockSpec((tm, H), lambda i: (i, 0)),   # x rows
                    pl.BlockSpec((H, M), lambda i: (0, 0)),    # W1 resident
                    pl.BlockSpec((1, M), lambda i: (0, 0)),    # b1
                    pl.BlockSpec((M, H), lambda i: (0, 0)),    # W2 resident
                    pl.BlockSpec((1, H), lambda i: (0, 0)),    # b2
                ],
                out_specs=pl.BlockSpec((tm, H), lambda i: (i, 0)),
            ),
            compiler_params=pltpu.CompilerParams(
                dimension_semantics=("parallel",),
                vmem_limit_bytes=vmem_limit,
            ),
            cost_estimate=cost,
        )(x2, w1, b1, w2, b2)
        return out.reshape(orig_shape)

    # ----- fallback path: chunk mlp_dim, fp32 accumulator -------------------
    # Bigger row tile so per-step flops-per-weight-byte clears the HBM roofline.
    row_tile_c = max(row_tile, 512)
    tm = _pick_row_tile(N, row_tile_c)
    num_row = _cdiv(N, tm)

    tM = None
    for cand in (1024, 512, 256, 128):
        if M % cand == 0:
            chunk_need = (2 * tm * H * (xsize + osize)   # x/out tiles (dbuf)
                          + 4 * H * cand * wsize         # W1/W2 chunks (dbuf)
                          + tm * H * 4                   # fp32 accumulator
                          + 2 * (cand + H) * 4)          # biases
            if chunk_need <= budget:
                tM = cand
                break
    if tM is None:
        # TODO(synk): mlp_dim not divisible by 128 (or any chunk fits) -- fall
        # back to a single full-M chunk; may exceed the VMEM budget.
        tM = M
    num_m = _cdiv(M, tM)

    chunk_need = (2 * tm * H * (xsize + osize) + 4 * H * tM * wsize
                  + tm * H * 4 + 2 * (tM + H) * 4)
    vmem_limit = min(int(vmem_cap * 0.75),
                     max(32 << 20, chunk_need + (16 << 20)))
    cost = pl.CostEstimate(
        flops=4 * num_row * tm * H * M,
        transcendentals=num_row * tm * M,
        bytes_accessed=(N * H * (xsize + osize)
                        + num_row * weight_bytes       # weights re-read per row tile
                        + num_row * bias_bytes),
    )
    kernel = functools.partial(_mlp_chunked_kernel,
                               approximate_gelu=approximate_gelu)
    out = pl.pallas_call(
        kernel,
        out_shape=jax.ShapeDtypeStruct((N, H), out_dtype),
        grid_spec=pltpu.PrefetchScalarGridSpec(
            num_scalar_prefetch=0,
            grid=(num_row, num_m),                     # reduction (M) axis last
            in_specs=[
                pl.BlockSpec((tm, H), lambda i, j: (i, 0)),    # x rows
                pl.BlockSpec((H, tM), lambda i, j: (0, j)),    # W1 chunk
                pl.BlockSpec((1, tM), lambda i, j: (0, j)),    # b1 chunk
                pl.BlockSpec((tM, H), lambda i, j: (j, 0)),    # W2 chunk
                pl.BlockSpec((1, H), lambda i, j: (0, 0)),     # b2
            ],
            out_specs=pl.BlockSpec((tm, H), lambda i, j: (i, 0)),
            scratch_shapes=[pltpu.VMEM((tm, H), jnp.float32)],
        ),
        compiler_params=pltpu.CompilerParams(
            dimension_semantics=("parallel", "arbitrary"),
            vmem_limit_bytes=vmem_limit,
        ),
        cost_estimate=cost,
    )(x2, w1, b1, w2, b2)
    return out.reshape(orig_shape)


# ---------------------------------------------------------------------------
# Param init matching the PyTorch module
# ---------------------------------------------------------------------------
def init_mlp_params(key, hidden_size, mlp_dim, dtype=jnp.float32):
    """xavier_uniform_ for weights, normal(std=1e-6) for biases.
    Stored as (in_features, out_features) so that y = x @ W + b."""
    k1, k2, k3, k4 = jax.random.split(key, 4)
    bound1 = math.sqrt(6.0 / (hidden_size + mlp_dim))
    bound2 = math.sqrt(6.0 / (mlp_dim + hidden_size))
    w1 = jax.random.uniform(k1, (hidden_size, mlp_dim), dtype,
                            minval=-bound1, maxval=bound1)
    w2 = jax.random.uniform(k2, (mlp_dim, hidden_size), dtype,
                            minval=-bound2, maxval=bound2)
    b1 = 1e-6 * jax.random.normal(k3, (mlp_dim,), dtype)
    b2 = 1e-6 * jax.random.normal(k4, (hidden_size,), dtype)
    return w1, b1, w2, b2


if __name__ == "__main__":
    # Small config: batch=2, seq=8, hidden_size=32, mlp_dim=64
    B, S, H, M = 2, 8, 32, 64
    key = jax.random.PRNGKey(0)
    kx, kp = jax.random.split(key)

    x = jax.random.normal(kx, (B, S, H), jnp.float32)
    w1, b1, w2, b2 = init_mlp_params(kp, H, M)

    # One-time param prep (hoists bf16 cast out of the per-call path).
    params = prepare_mlp_params(w1, b1, w2, b2)

    y = mlp_forward(x, *params)
    y = jax.block_until_ready(y)
    assert y.shape == (B, S, H)

    # Reference in plain JAX with the same bf16-operand / fp32-accumulation math.
    xb = x.reshape(-1, H).astype(jnp.bfloat16)
    w1b = w1.astype(jnp.bfloat16)
    w2b = w2.astype(jnp.bfloat16)
    h_ref = _gelu(jnp.dot(xb, w1b, preferred_element_type=jnp.float32) + b1)
    y_ref = (jnp.dot(h_ref.astype(jnp.bfloat16), w2b,
                     preferred_element_type=jnp.float32) + b2).reshape(B, S, H)
    assert jnp.allclose(y, y_ref, atol=1e-4, rtol=1e-4)

    # Loose sanity check against a pure-fp32 reference (bf16 operand rounding).
    h32 = _gelu(x.reshape(-1, H) @ w1 + b1)
    y32 = (h32 @ w2 + b2).reshape(B, S, H)
    assert jnp.allclose(y, y32, atol=5e-2, rtol=5e-2)

    print("KERNEL_OK")
</pallas_src>

<mosaic_0001>
module attributes {stable_mosaic.version = 11 : i64} {
  func.func @_mlp_resident_kernel(%arg0: i32, %arg1: memref<8x32xf32, #tpu.memory_space<vmem>>, %arg2: memref<32x64xbf16, #tpu.memory_space<vmem>>, %arg3: memref<1x64xf32, #tpu.memory_space<vmem>>, %arg4: memref<64x32xbf16, #tpu.memory_space<vmem>>, %arg5: memref<1x32xf32, #tpu.memory_space<vmem>>, %arg6: memref<8x32xf32, #tpu.memory_space<vmem>>) attributes {dimension_semantics = [#tpu.dimension_semantics<parallel>], iteration_bounds = array<i64: 2>, scalar_prefetch = 0 : i64, scratch_operands = 0 : i64, tpu.core_type = #tpu.core_type<tc>, window_params = [{transform_indices = @transform_0, window_bounds = array<i64: 8, 32>}, {pipeline_mode = #tpu.pipeline_mode<synchronous>, transform_indices = @transform_1, window_bounds = array<i64: 32, 64>}, {pipeline_mode = #tpu.pipeline_mode<synchronous>, transform_indices = @transform_2, window_bounds = array<i64: 1, 64>}, {pipeline_mode = #tpu.pipeline_mode<synchronous>, transform_indices = @transform_3, window_bounds = array<i64: 64, 32>}, {pipeline_mode = #tpu.pipeline_mode<synchronous>, transform_indices = @transform_4, window_bounds = array<i64: 1, 32>}, {transform_indices = @transform_5, window_bounds = array<i64: 8, 32>}]} {
    %c0 = arith.constant 0 : index
    %c0_0 = arith.constant 0 : index
    %0 = vector.load %arg1[%c0, %c0_0] : memref<8x32xf32, #tpu.memory_space<vmem>>, vector<8x32xf32>
    %1 = arith.truncf %0 : vector<8x32xf32> to vector<8x32xbf16>
    %c0_1 = arith.constant 0 : index
    %c0_2 = arith.constant 0 : index
    %2 = vector.load %arg2[%c0_1, %c0_2] : memref<32x64xbf16, #tpu.memory_space<vmem>>, vector<32x64xbf16>
    %cst = arith.constant dense<0.000000e+00> : vector<8x64xf32>
    %3 = tpu.matmul %1, %2, %cst {dimension_numbers = #tpu.dot_dimension_numbers<[1], [0], [0], [1], [0, 0, 1, 1], [], []>} : vector<8x32xbf16>, vector<32x64xbf16>, vector<8x64xf32> -> vector<8x64xf32>
    %c0_3 = arith.constant 0 : index
    %c0_4 = arith.constant 0 : index
    %4 = vector.load %arg3[%c0_3, %c0_4] : memref<1x64xf32, #tpu.memory_space<vmem>>, vector<1x64xf32>
    %5 = vector.broadcast %4 : vector<1x64xf32> to vector<8x64xf32>
    %6 = arith.addf %3, %5 : vector<8x64xf32>
    %cst_5 = arith.constant 5.000000e-01 : f32
    %7 = vector.broadcast %cst_5 : f32 to vector<8x64xf32>
    %8 = arith.mulf %7, %6 : vector<8x64xf32>
    %cst_6 = arith.constant 0.707106769 : f32
    %9 = vector.broadcast %cst_6 : f32 to vector<8x64xf32>
    %10 = arith.mulf %6, %9 : vector<8x64xf32>
    %11 = math.erf %10 : vector<8x64xf32>
    %cst_7 = arith.constant 1.000000e+00 : f32
    %12 = vector.broadcast %cst_7 : f32 to vector<8x64xf32>
    %13 = arith.addf %12, %11 : vector<8x64xf32>
    %14 = arith.mulf %8, %13 : vector<8x64xf32>
    %15 = arith.truncf %14 : vector<8x64xf32> to vector<8x64xbf16>
    %c0_8 = arith.constant 0 : index
    %c0_9 = arith.constant 0 : index
    %16 = vector.load %arg4[%c0_8, %c0_9] : memref<64x32xbf16, #tpu.memory_space<vmem>>, vector<64x32xbf16>
    %cst_10 = arith.constant dense<0.000000e+00> : vector<8x32xf32>
    %17 = tpu.matmul %15, %16, %cst_10 {dimension_numbers = #tpu.dot_dimension_numbers<[1], [0], [0], [1], [0, 0, 1, 1], [], []>} : vector<8x64xbf16>, vector<64x32xbf16>, vector<8x32xf32> -> vector<8x32xf32>
    %c0_11 = arith.constant 0 : index
    %c0_12 = arith.constant 0 : index
    %18 = vector.load %arg5[%c0_11, %c0_12] : memref<1x32xf32, #tpu.memory_space<vmem>>, vector<1x32xf32>
    %19 = vector.broadcast %18 : vector<1x32xf32> to vector<8x32xf32>
    %20 = arith.addf %17, %19 : vector<8x32xf32>
    %c0_13 = arith.constant 0 : index
    %c0_14 = arith.constant 0 : index
    %21 = vector.load %arg6[%c0_13, %c0_14] : memref<8x32xf32, #tpu.memory_space<vmem>>, vector<8x32xf32>
    tpu.vector_store %arg6[%c0_13, %c0_14], %20 {strides = array<i32>} : memref<8x32xf32, #tpu.memory_space<vmem>>, vector<8x32xf32>,
    return
  }
  func.func @transform_0(%arg0: i32) -> (i32, i32) {
    %c0_i32 = arith.constant 0 : i32
    %c0_i32_0 = arith.constant 0 : i32
    return %arg0, %c0_i32 : i32, i32
  }
  func.func @transform_1(%arg0: i32) -> (i32, i32) {
    %c0_i32 = arith.constant 0 : i32
    %c0_i32_0 = arith.constant 0 : i32
    %c0_i32_1 = arith.constant 0 : i32
    return %c0_i32, %c0_i32_0 : i32, i32
  }
  func.func @transform_2(%arg0: i32) -> (i32, i32) {
    %c0_i32 = arith.constant 0 : i32
    %c0_i32_0 = arith.constant 0 : i32
    %c0_i32_1 = arith.constant 0 : i32
    return %c0_i32, %c0_i32_0 : i32, i32
  }
  func.func @transform_3(%arg0: i32) -> (i32, i32) {
    %c0_i32 = arith.constant 0 : i32
    %c0_i32_0 = arith.constant 0 : i32
    %c0_i32_1 = arith.constant 0 : i32
    return %c0_i32, %c0_i32_0 : i32, i32
  }
  func.func @transform_4(%arg0: i32) -> (i32, i32) {
    %c0_i32 = arith.constant 0 : i32
    %c0_i32_0 = arith.constant 0 : i32
    %c0_i32_1 = arith.constant 0 : i32
    return %c0_i32, %c0_i32_0 : i32, i32
  }
  func.func @transform_5(%arg0: i32) -> (i32, i32) {
    %c0_i32 = arith.constant 0 : i32
    %c0_i32_0 = arith.constant 0 : i32
    return %arg0, %c0_i32 : i32, i32
  }
}

</mosaic_0001>

<bundles_post_ra>
// kernel: tpu_custom_call.1
= control target key start
LH: loop header
LB: loop body
LE: loop exit
PB: predicated region body
PF: predicated region fallthrough
CT: control target
= control target key end

     0   :  { %10 = vsyncpa [#allocation3], 0  ;;  %s770_s0 = inlined_call_operand.vmem [shape: f32[16,32], index: 0, kind: input, shape index: {}]   ;;  %s771_s1 = inlined_call_operand.vmem [shape: bf16[32,64], index: 1, kind: input, shape index: {}]   ;;  %s772_s2 = inlined_call_operand.vmem [shape: f32[1,64], index: 2, kind: input, shape index: {}]   ;;  %s773_s3 = inlined_call_operand.vmem [shape: bf16[64,32], index: 3, kind: input, shape index: {}]   ;;  %s774_s4 = inlined_call_operand.vmem [shape: f32[1,32], index: 4, kind: input, shape index: {}]   ;;  %s775_s5 = inlined_call_operand.hbm [shape: f32[16,32], index: 5, kind: output, shape index: {}]  }
   0x1   :  { %12 = vsyncpa [#allocation3 + $0x1], 0  ;;  %s645_s18 = smov 0   ;;  %s647_s19 = smov 0  }
   0x2   :  { %s649_s20 = smov 0   ;;  %s651_s21 = smov 0  }
   0x3 LB: > { %s666_s22 = sadd.s32 4294967295, %s610_s21   ;;  %s453_s23 = sadd.s32 4294967294, %s610_s21   ;;  %s610_s21 = sphi %s651_s21, %s781_s21   ;;  %s606_s20 = sphi %s649_s20, %s780_s20   ;;  %s602_s19 = sphi %s647_s19, %s779_s19   ;;  %s598_s18 = sphi %s645_s18, %s778_s18  }
   0x4   : > { %s670_s24 = sadd.s32 1, %s610_s21   ;;  %s135_s25 = sadd.s32 1, %s606_s20 }
   0x5   : > { %s132_s26 = ssub.s32 %s610_s21, %s670_s24  ;;  %p145_p0 = scmp.ne.s32.totalorder %s606_s20, %s602_s19 }
   0x6   : > { %p133_p1 = scmp.eq.s32.totalorder %s132_s26, 0  ;;  %p146_p2 = scmp.eq.s32.totalorder %s666_s22, 1 }
   0x7   : > { %p151_p3 = scmp.ne.s32.totalorder %s602_s19, %s598_s18  ;;  %p152_p4 = scmp.eq.s32.totalorder %s453_s23, 1 }
   0x8   : > { %s681_s27 = scalar_select %p133_p1, %s606_s20, %s135_s25  }
   0x9   : > { %p683_p5 = por %p146_p2, %p145_p0  ;;  %p687_p6 = por %p152_p4, %p151_p3 }
   0xa   : > { %p456_p7 = scmp.ge.s32.totalorder %s610_s21, 1  ;;  %p189_p8 = scmp.lt.s32.totalorder %s610_s21, 3 }
   0xc   : > { %p190_p9 = pnand %p456_p7, %p189_p8 }
   0xd   : > { %p216_p10 = scmp.lt.s32.totalorder (!%p190_p9), %s666_s22, 1  ;;  %s213_s8 = sand.u32 (!%p190_p9), 1, %s602_s19  }
   0xe   : > { %193 = sbr.rel (%p190_p9) target bundleno = 454 (0x1c6), region = 40  ;;  %s470_s12 = sshll.u32 (!%p190_p9), %s666_s22, 7 }
   0xf   : > { %s728_s17 = scalar_lea.hbm (!%p190_p9), %s775_s5, %s470_s12  ;;  %s381_s23 = scalar_lea.sflag (!%p190_p9), [#allocation3], %s213_s8 }
  0x10   : > { %s614_s25 = smov (!%p190_p9), [#allocation2]  }
  0x11   : > { %s554_s26 = sshll.u32 (!%p190_p9), %s614_s25, 4  ;;  %s555_s26 = int_to_ptr.vmem [resolvable:$false] %s554_s26 }
  0x12   : > { %s556_s30 = scalar_lea.vmem (!%p190_p9), %s555_s26, 256 }
  0x13   : > { %v542_v0 = vld [vmem:[%s771_s1 + $0x8] sm:$0xff]   ;;  %v612_v1 = vmov 0.0   ;;  %v543_v2 = vld [vmem:[%s771_s1] sm:$0xff]   ;;  %vm613_vm0 = vmmov 0   ;;  %s217_s9 = scalar_select %p216_p10, %s666_s22, 1  ;;  %vm246_vm1 = vcmask 261120  }
  0x14   : > { %481 = vmatprep.subr.bf16.mxu0 %v612_v1  ;;  %489 = vmatprep.subr.bf16.mxu1 %v612_v1  ;;  %v544_v5 = vld [vmem:[%s773_s3 + $0x18] sm:$0xff]   ;;  %v545_v6 = vld [vmem:[%s773_s3 + $0x10] sm:$0xff]   ;;  %v546_v7 = vld [vmem:[%s773_s3 + $0x8] sm:$0xff]   ;;  %vm335_vm2 = vcmask 523264  }
  0x15   : > { %482 = vmatpush3.bf16.msra.mxu0 %v542_v0  ;;  %485 = vmatprep.mubr.msk.bf16.mxu0 %vm613_vm0, %v612_v1  ;;  %s458_s10 = sshll.u32 %s217_s9, 3  ;;  %v547_v8 = vld [vmem:[%s773_s3] sm:$0xff]   ;;  %s457_s9 = sshll.u32 %s213_s8, 3 }
  0x16   : > { %483 = vmatprep.subr.bf16.mxu0 %v612_v1  ;;  %497 = vmatprep.mubr.msk.bf16.mxu1 %vm613_vm0, %v612_v1  ;;  %s219_s13 = scalar_lea.vmem %s770_s0, %s458_s10  ;;  %v459_v9 = vld [vmem:[%s772_s2] ss:$0 sm:$0xff] }
  0x17   : > { %v221_v3 = vld [vmem:[%s219_s13] sm:$0xff]  ;;  %490 = vmatpush3.bf16.msra.mxu1 %v544_v5  ;;  %s215_s13 = scalar_lea.vmem [#allocation2], %s457_s9 }
  0x18   : > { %v222_v4 = vpack.c.bf16 %v221_v3, %v221_v3  ;;  %491 = vmatprep.subr.bf16.mxu1 %v612_v1  ;;  %v463_v21 = vld [vmem:[%s774_s4] ss:$0 sm:$0xff]  ;;  %s394_s14 = sshll.u32 %s215_s13, 4  ;;  %s730_s14 = int_to_ptr.vmem [resolvable:$true] %s394_s14 }
  0x19   : > { %484 = vmatpush3.bf16.msra.mxu0 %v543_v2  ;;  %s550_s22 = scalar_lea.vmem %s730_s14, 128  ;;  %p557_p0 = scmp.lt.s32.totalorder %s730_s14, %s555_s26 }
  0x1a   : > { %p551_p11 = scmp.ne.s32.totalorder %s730_s14, %s550_s22  ;;  %p558_p1 = scmp.lt.s32.totalorder %s556_s30, %s550_s22 }
  0x1b   : > { %492 = vmatpush3.bf16.msra.mxu1 %v545_v6 }
  0x1c   : > { %486 = vmatmul.mubr.msk.bf16.vlgmr.msra.gmra.mxu0 %vm246_vm1, %v222_v4  ;;  %493 = vmatprep.subr.bf16.mxu1 %v612_v1  ;;  %p552_p12 = pnand %p551_p11, %p683_p5  ;;  %p559_p2 = por %p558_p1, %p557_p0 }
  0x1e   : > { %p553_p13 = pneg %p552_p12 }
  0x1f   : > { %494 = vmatpush3.bf16.msra.mxu1 %v546_v7 }
  0x20   : > { %495 = vmatprep.subr.bf16.mxu1 %v612_v1  ;;  %p560_p3 = pnand %p559_p2, %p553_p13 }
  0x23   : > { %496 = vmatpush3.bf16.msra.mxu1 %v547_v8 }
  0xdc   : > { %v284_v10 = vpop.f32.mrf.mxu0 }
  0xdd   : > { %v285_v11 = vadd.f32 %v459_v9, %v284_v10 }
  0xde   : > { %v487_v12 = vpop.f32.mrf.mxu0 }
  0xdf   : > { %v291_v13 = vmul.f32 0.70710677, %v285_v11  ;;  %v290_v17 = vmul.f32 0.5, %v285_v11 }
  0xe0   : > { %v287_v14 = vpop.f32.mrf.mxu0 }
  0xe1   : > { %548 = verf.f32 %v291_v13 }
  0xe2   : > { %v488_v15 = vpop.f32.mrf.mxu0 }
  0xee   : > { %v549_v16 = vpop.eup %548 }
  0xef   : > { %v293_v18 = vadd.f32 1.0, %v549_v16 }
  0xf1   : > { %v294_v19 = vmul.f32 %v293_v18, %v290_v17 }
  0xf3   : > { %v295_v20 = vpack.c.bf16 %v294_v19, %v294_v19 }
  0xf5   : > { %498 = vmatmul.mubr.msk.bf16.vlgmr.msra.gmra.mxu1 %vm335_vm2, %v295_v20 }
 0x1b5   : > { %v373_v22 = vpop.f32.mrf.mxu1 }
 0x1b6   : > { %v374_v23 = vadd.f32 %v463_v21, %v373_v22 }
 0x1b7   : > { %v499_v24 = vpop.f32.mrf.mxu1 }
 0x1b8   : > { %379 = vst.msk [vmem:[%s215_s13] sm:$0xff] %vm246_vm1, %v374_v23 }
 0x1b9   : > { %v376_v25 = vpop.f32.mrf.mxu1 }
 0x1ba   : > { %563 = shalt.err (!%p560_p3)
}
 0x1bb   : > { %s564_s6 = scalar_lea.hbm %s728_s17, 128  ;;  %s568_s9 = scalar_lea.hbm %s775_s5, 256 }
 0x1bc   : > { %p565_p4 = scmp.ne.s32.totalorder %s728_s17, %s564_s6  ;;  %p569_p9 = scmp.lt.s32.totalorder %s728_s17, %s775_s5 }
 0x1bd   : > { %p570_p10 = scmp.lt.s32.totalorder %s568_s9, %s564_s6 }
 0x1be   : > { %p566_p7 = pnand %p565_p4, %p683_p5 }
 0x1bf   : > { %p571_p11 = por %p570_p10, %p569_p9 }
 0x1c0   : > { %p567_p8 = pneg %p566_p7 }
 0x1c2   : > { %p572_p12 = pnand %p571_p11, %p567_p8 }
 0x1c4   : > { %575 = shalt.err (!%p572_p12)
}
 0x1c5   : > { %501 = dma.vmem_to_hbm [thread:$0]  (%p683_p5), %s730_s14, 128, %s728_s17, %s381_s23   ;;  %v500_v26 = vpop.f32.mrf.mxu1 }
 0x1c6 PF: > { %p507_p13 = scmp.ge.s32.totalorder %s610_s21, 2  ;;  %s406_s12 = sand.u32 1, %s598_s18  }
 0x1c7   : > { %s407_s13 = scalar_lea.sflag [#allocation3], %s406_s12 }
 0x1c8   : > { %p504_p0 = pnand %p507_p13, %p687_p6 }
 0x1ca   : > { %p505_p1 = pneg %p504_p0 }
 0x1cc   : > { %593 = dma.done.wait (%p505_p1), %s407_s13, 128  }
 0x1cd   : > { %595 = vsyncadd (%p505_p1), %s407_s13, 4294967168  ;;  %p15_p2 = scmp.ge.s32.totalorder %s670_s24, 4   ;;  %s778_s18 = smov %s602_s19 }
 0x1ce   : > { %s779_s19 = smov %s606_s20  ;;  %s780_s20 = smov %s681_s27 }
 0x1cf   : > { %s781_s21 = smov %s670_s24  ;;  %17 = sbr.rel (!%p15_p2) target bundleno = 3 (0x3), region = 75 }
 0x1d4   :  { %412 = vsyncpa [#allocation3], 1 }
 0x1d5   :  { %414 = vsyncpa [#allocation3 + $0x1], 1 }

</bundles_post_ra>
